<compile_context>
chip_gen: v7x
topology: tpu7x:2x2x1
jax: 0.10.0
libtpu: 0.0.40
codegen_flags: <defaults>
</compile_context>

<pallas_src>
import functools

import jax
import jax.numpy as jnp
from jax import lax
from jax.experimental import pallas as pl
from jax.experimental.pallas import tpu as pltpu


# --------------------------- generation-aware VMEM budgets --------------------

def _phys_vmem_bytes():
    try:
        return int(pltpu.get_tpu_info().vmem_capacity_bytes)
    except Exception:
        return 64 << 20                       # conservative: v7x per-TC VMEM


_VMEM_PHYS = _phys_vmem_bytes()
if _VMEM_PHYS >= (96 << 20):                  # v5e / v6e: 128 MiB VMEM
    _ROW_TILE_BUDGET = 32 << 20
    _VMEM_LIMIT_CAP = 48 << 20
else:                                         # v7x: 64 MiB per TensorCore
    _ROW_TILE_BUDGET = 12 << 20
    _VMEM_LIMIT_CAP = 40 << 20


def _largest_aligned_divisor(n, cap, align):
    """Largest divisor of n that is <= cap and a multiple of align (or None)."""
    best = None
    d = 1
    while d * d <= n:
        if n % d == 0:
            for t in (d, n // d):
                if t <= cap and t % align == 0 and (best is None or t > best):
                    best = t
        d += 1
    return best


# ----------------------------------------------------------------------------
# 3x3 convolution: row-tiled, haloed manual DMA (bf16), tap-loop / im2col matmul
# ----------------------------------------------------------------------------

def _conv_kernel(x_hbm, w_ref, b_ref, o_ref, xbuf, sem, *,
                 TH, W, KH, KW, Cin, Cout, relu, loop_taps):
    # x_hbm : (B, Hp, Wp, Cin) bf16, raw HBM ref
    # w_ref : loop_taps -> (KH*KW, Cin, Cout) bf16 ; else (KH*KW*Cin, Cout) bf16
    # b_ref : (1, Cout) f32
    # o_ref : (1, TH, W, Cout) bf16
    # xbuf  : (2, TH+KH-1, Wp, Cin) bf16 double buffer
    bi = pl.program_id(0)
    r = pl.program_id(1)
    halo = TH + KH - 1

    def copy_for(row_tile, slot_):
        return pltpu.make_async_copy(
            x_hbm.at[bi, pl.ds(row_tile * TH, halo)],
            xbuf.at[slot_], sem.at[slot_])

    @pl.when(r == 0)
    def _():
        copy_for(0, 0).start()

    slot = lax.rem(r, 2)
    copy_for(r, slot).wait()                  # descriptor matches the started copy

    @pl.when(r + 1 < pl.num_programs(1))
    def _():
        copy_for(r + 1, 1 - slot).start()

    x = xbuf[slot]                            # (halo, Wp, Cin) bf16
    if loop_taps:
        acc = None
        t = 0
        for dy in range(KH):
            for dx in range(KW):
                tap = x[dy:dy + TH, dx:dx + W, :].reshape(TH * W, Cin)
                d = jnp.dot(tap, w_ref[t], preferred_element_type=jnp.float32)
                acc = d if acc is None else acc + d
                t += 1
    else:
        taps = [x[dy:dy + TH, dx:dx + W, :].reshape(TH * W, Cin)
                for dy in range(KH) for dx in range(KW)]
        patches = taps[0] if len(taps) == 1 else jnp.concatenate(taps, axis=-1)
        acc = jnp.dot(patches, w_ref[...], preferred_element_type=jnp.float32)

    acc = acc + b_ref[...]
    if relu:
        acc = jnp.maximum(acc, 0.0)
    o_ref[0] = acc.reshape(TH, W, Cout).astype(o_ref.dtype)


def _choose_row_tile(H, Wp, W, Cin, Cout, KH, KW, loop_taps):
    def footprint(TH):
        halo = TH + KH - 1
        xb = 2 * halo * Wp * Cin * 2          # bf16 double-buffered halo DMA
        xv = halo * Wp * Cin * 2              # loaded bf16 tile value
        ob = 2 * TH * W * Cout * 2            # bf16 pipelined output blocks
        ac = 2 * TH * W * Cout * 4            # f32 accumulator (+headroom)
        if loop_taps:
            sl = 2 * TH * W * Cin * 2         # a couple of live bf16 taps
        else:
            sl = 2 * TH * W * KH * KW * Cin * 2   # im2col slab + tap copies
        return xb + xv + ob + ac + sl

    divisors = [d for d in range(1, H + 1) if H % d == 0]
    feasible = [d for d in divisors if footprint(d) <= _ROW_TILE_BUDGET]
    if not feasible:
        TH = 1
    else:
        # prefer TH whose matmul M dim (TH*W) is 128-aligned for the MXU
        aligned = [d for d in feasible if (d * W) % 128 == 0]
        TH = max(aligned) if aligned else max(feasible)
    return TH, footprint(TH)


_conv3_cache = {}


def _conv3x3(x, w, b, relu):
    """Valid conv (caller pads). x: (B,Hp,Wp,Cin), w: (KH,KW,Cin,Cout) bf16."""
    B, Hp, Wp, Cin = x.shape
    KH, KW, _, Cout = w.shape
    H, W = Hp - KH + 1, Wp - KW + 1
    loop_taps = (KH * KW * Cin) > 1024
    TH, tile_bytes = _choose_row_tile(H, Wp, W, Cin, Cout, KH, KW, loop_taps)
    n_rows = H // TH
    key = (B, Hp, Wp, Cin, KH, KW, Cout, relu, TH, loop_taps)
    if key not in _conv3_cache:
        kern = functools.partial(_conv_kernel, TH=TH, W=W, KH=KH, KW=KW,
                                 Cin=Cin, Cout=Cout, relu=relu,
                                 loop_taps=loop_taps)
        if loop_taps:
            w_spec = pl.BlockSpec((KH * KW, Cin, Cout), lambda bi, r: (0, 0, 0))
        else:
            w_spec = pl.BlockSpec((KH * KW * Cin, Cout), lambda bi, r: (0, 0))
        wbytes = 2 * KH * KW * Cin * Cout * 2 + 2 * Cout * 4
        limit = int(min(_VMEM_LIMIT_CAP,
                        max(24 << 20, tile_bytes + wbytes + (6 << 20))))
        _conv3_cache[key] = pl.pallas_call(
            kern,
            out_shape=jax.ShapeDtypeStruct((B, H, W, Cout), jnp.bfloat16),
            grid=(B, n_rows),
            in_specs=[
                pl.BlockSpec(memory_space=pl.ANY),     # x stays in HBM
                w_spec,
                pl.BlockSpec((1, Cout), lambda bi, r: (0, 0)),
            ],
            out_specs=pl.BlockSpec((1, TH, W, Cout), lambda bi, r: (bi, r, 0, 0)),
            scratch_shapes=[pltpu.VMEM((2, TH + KH - 1, Wp, Cin), jnp.bfloat16),
                            pltpu.SemaphoreType.DMA((2,))],
            compiler_params=pltpu.CompilerParams(
                dimension_semantics=("parallel", "arbitrary"),
                vmem_limit_bytes=limit),
        )
        # TODO(synk): when B == 1 on v7x, add a second "parallel" split over row
        # halves so both TensorCores are used.
    if loop_taps:
        w2 = w.reshape(KH * KW, Cin, Cout).astype(jnp.bfloat16)
    else:
        w2 = w.reshape(KH * KW * Cin, Cout).astype(jnp.bfloat16)
    # TODO(synk): for Cout in {1, 3} the output last dim gives masked stores; a
    # lane-dense packed layout would speed up those (tiny) layers further.
    return _conv3_cache[key](x.astype(jnp.bfloat16), w2,
                             b.reshape(1, Cout).astype(jnp.float32))


# ----------------------------------------------------------------------------
# 1x1 convolution: flat auto-pipelined matmul over (B*H*W, Cin) x (Cin, Cout)
# ----------------------------------------------------------------------------

def _mm_kernel(x_ref, w_ref, b_ref, o_ref, *, relu):
    acc = jnp.dot(x_ref[...], w_ref[...], preferred_element_type=jnp.float32)
    acc = acc + b_ref[...]
    if relu:
        acc = jnp.maximum(acc, 0.0)
    o_ref[...] = acc.astype(o_ref.dtype)


_mm_cache = {}


def _conv1x1(x, w, b, relu):
    B, H, W, Cin = x.shape
    Cout = w.shape[-1]
    M = B * H * W
    if M <= 512:
        TM = M
    else:
        TM = _largest_aligned_divisor(M, 512, 8) or M
    key = (M, Cin, Cout, relu, TM)
    if key not in _mm_cache:
        kern = functools.partial(_mm_kernel, relu=relu)
        _mm_cache[key] = pl.pallas_call(
            kern,
            out_shape=jax.ShapeDtypeStruct((M, Cout), jnp.bfloat16),
            grid=(M // TM,),
            in_specs=[pl.BlockSpec((TM, Cin), lambda i: (i, 0)),
                      pl.BlockSpec((Cin, Cout), lambda i: (0, 0)),
                      pl.BlockSpec((1, Cout), lambda i: (0, 0))],
            out_specs=pl.BlockSpec((TM, Cout), lambda i: (i, 0)),
            compiler_params=pltpu.CompilerParams(
                dimension_semantics=("parallel",)),
        )
    xm = x.reshape(M, Cin).astype(jnp.bfloat16)
    out = _mm_cache[key](xm, w.reshape(Cin, Cout).astype(jnp.bfloat16),
                         b.reshape(1, Cout).astype(jnp.float32))
    return out.reshape(B, H, W, Cout)


def conv2d(x, w, b, relu=False):
    if w.shape[0] == 1 and w.shape[1] == 1:
        return _conv1x1(x, w, b, relu)
    return _conv3x3(x, w, b, relu)


# ----------------------------------------------------------------------------
# Mean/variance normalization: tiled moments pass + normalize pass
# ----------------------------------------------------------------------------

def _moments_kernel(x_ref, mean_ref, std_ref, s1, s2, *, eps, n, denom):
    @pl.when(pl.program_id(1) == 0)
    def _():
        s1[...] = jnp.zeros_like(s1)
        s2[...] = jnp.zeros_like(s2)
    x = x_ref[0].astype(jnp.float32)                    # (T, C)
    s1[...] += jnp.sum(x, axis=0, keepdims=True)
    s2[...] += jnp.sum(x * x, axis=0, keepdims=True)

    @pl.when(pl.program_id(1) == pl.num_programs(1) - 1)
    def _():
        mean = s1[...] / n
        var = jnp.maximum(s2[...] - n * mean * mean, 0.0) / denom   # unbiased
        mean_ref[0] = mean
        std_ref[0] = jnp.sqrt(var + eps)


def _normalize_kernel(x_ref, m_ref, s_ref, o_ref):
    x = x_ref[0].astype(jnp.float32)
    o_ref[0] = ((x - m_ref[0]) / s_ref[0]).astype(o_ref.dtype)


def _mvn_tile(HW):
    if HW <= 1024:
        return HW
    return _largest_aligned_divisor(HW, 1024, 8) or HW


_mom_cache = {}
_norm_cache = {}


def calc_mean_std(x):
    B, H, W, C = x.shape
    HW = H * W
    T = _mvn_tile(HW)
    key = (B, HW, C, T, str(x.dtype))
    if key not in _mom_cache:
        n = float(HW)
        kern = functools.partial(_moments_kernel, eps=1e-5, n=n,
                                 denom=float(max(HW - 1, 1)))
        _mom_cache[key] = pl.pallas_call(
            kern,
            out_shape=(jax.ShapeDtypeStruct((B, 1, C), jnp.float32),
                       jax.ShapeDtypeStruct((B, 1, C), jnp.float32)),
            grid=(B, HW // T),
            in_specs=[pl.BlockSpec((1, T, C), lambda b, i: (b, i, 0))],
            out_specs=(pl.BlockSpec((1, 1, C), lambda b, i: (b, 0, 0)),
                       pl.BlockSpec((1, 1, C), lambda b, i: (b, 0, 0))),
            scratch_shapes=[pltpu.VMEM((1, C), jnp.float32),
                            pltpu.VMEM((1, C), jnp.float32)],
            compiler_params=pltpu.CompilerParams(
                dimension_semantics=("parallel", "arbitrary")),
        )
    return _mom_cache[key](x.reshape(B, HW, C))


def mean_variance_norm(x):
    B, H, W, C = x.shape
    mean, std = calc_mean_std(x)
    HW = H * W
    T = _mvn_tile(HW)
    key = (B, HW, C, T, str(x.dtype))
    if key not in _norm_cache:
        _norm_cache[key] = pl.pallas_call(
            _normalize_kernel,
            out_shape=jax.ShapeDtypeStruct((B, HW, C), x.dtype),
            grid=(B, HW // T),
            in_specs=[pl.BlockSpec((1, T, C), lambda b, i: (b, i, 0)),
                      pl.BlockSpec((1, 1, C), lambda b, i: (b, 0, 0)),
                      pl.BlockSpec((1, 1, C), lambda b, i: (b, 0, 0))],
            out_specs=pl.BlockSpec((1, T, C), lambda b, i: (b, i, 0)),
            compiler_params=pltpu.CompilerParams(
                dimension_semantics=("parallel", "parallel")),
        )
    return _norm_cache[key](x.reshape(B, HW, C), mean, std).reshape(B, H, W, C)


# ----------------------------------------------------------------------------
# MSE loss: tiled reduction with a lane-parallel (1,128) accumulator
# ----------------------------------------------------------------------------

def _mse_kernel(a_ref, b_ref, o_ref, acc_ref):
    @pl.when(pl.program_id(0) == 0)
    def _():
        acc_ref[...] = jnp.zeros_like(acc_ref)
    d = a_ref[...].astype(jnp.float32) - b_ref[...].astype(jnp.float32)
    acc_ref[...] += jnp.sum(d * d, axis=0, keepdims=True)       # sublane-only

    @pl.when(pl.program_id(0) == pl.num_programs(0) - 1)
    def _():
        o_ref[...] = jnp.sum(acc_ref[...], keepdims=True)        # one XLU reduce


_mse_cache = {}
_MSE_ROWS = 2048   # up to 2048x128 blocks per grid step


def mse_loss(a, b):
    n = a.size
    af = a.reshape(-1)
    bf = b.reshape(-1)
    total = ((n + 1023) // 1024) * 1024      # 8 x 128 alignment
    if total != n:                           # only tiny tensors ever pad
        af = jnp.pad(af, (0, total - n))
        bf = jnp.pad(bf, (0, total - n))
    R = total // 128                         # multiple of 8
    TR = _largest_aligned_divisor(R, _MSE_ROWS, 8)
    af = af.reshape(R, 128)
    bf = bf.reshape(R, 128)
    key = (R, TR, str(af.dtype), str(bf.dtype))
    if key not in _mse_cache:
        _mse_cache[key] = pl.pallas_call(
            _mse_kernel,
            out_shape=jax.ShapeDtypeStruct((1, 1), jnp.float32),
            grid=(R // TR,),
            in_specs=[pl.BlockSpec((TR, 128), lambda i: (i, 0)),
                      pl.BlockSpec((TR, 128), lambda i: (i, 0))],
            out_specs=pl.BlockSpec((1, 1), lambda i: (0, 0)),
            scratch_shapes=[pltpu.VMEM((1, 128), jnp.float32)],
            compiler_params=pltpu.CompilerParams(
                dimension_semantics=("arbitrary",)),
        )
    return _mse_cache[key](af, bf)[0, 0] / n


# ----------------------------------------------------------------------------
# Flash-style attention (online softmax), tiled over Nc (parallel) / Ns (reduce)
# ----------------------------------------------------------------------------

def _flash_attn_kernel(q_ref, k_ref, v_ref, *rest, C, with_stats):
    if with_stats:
        mean_ref, std_ref, m_sc, l_sc, acc_sc = rest
    else:
        o_ref, m_sc, l_sc, acc_sc = rest

    j = pl.program_id(2)

    @pl.when(j == 0)
    def _():
        m_sc[...] = jnp.full_like(m_sc, -jnp.inf)
        l_sc[...] = jnp.zeros_like(l_sc)
        acc_sc[...] = jnp.zeros_like(acc_sc)

    q = q_ref[0]                                          # (Tnc, C) bf16
    k = k_ref[0]                                          # (Tns, C) bf16
    s = lax.dot_general(q, k, (((1,), (1,)), ((), ())),
                        preferred_element_type=jnp.float32)   # (Tnc, Tns) f32

    m_new = jnp.maximum(m_sc[...], jnp.max(s, axis=-1, keepdims=True))
    alpha = jnp.exp(m_sc[...] - m_new)
    p = jnp.exp(s - m_new)

    l_sc[...] = alpha * l_sc[...] + jnp.sum(p, axis=-1, keepdims=True)
    acc_sc[...] = alpha * acc_sc[...] + jnp.dot(
        p.astype(jnp.bfloat16), v_ref[0], preferred_element_type=jnp.float32)
    m_sc[...] = m_new

    @pl.when(j == pl.num_programs(2) - 1)
    def _():
        acc = acc_sc[...]
        if with_stats:
            inv = 1.0 / l_sc[...]                         # exact (stats accuracy)
            mean = acc[:, :C] * inv
            ex2 = acc[:, C:] * inv
            mean_ref[0] = mean
            std_ref[0] = jnp.sqrt(jnp.maximum(ex2 - mean * mean, 0.0))
        else:
            inv = pl.reciprocal(l_sc[...], approx=True)
            o_ref[0] = (acc * inv).astype(o_ref.dtype)


def _pick_tile(n, cap):
    if n <= cap:
        return n
    start = cap - (cap % 8)
    for t in range(start, 7, -8):
        if n % t == 0:
            return t
    return n          # full dim fallback (always a legal block)


_attn_cache = {}


def _flash_attention(q, k, v, with_stats):
    # q: (B,Nc,C)  k: (B,Ns,C)  v: (B,Ns,C) or (B,Ns,2C) pre-fused for stats
    q = q.astype(jnp.bfloat16)
    k = k.astype(jnp.bfloat16)
    v = v.astype(jnp.bfloat16)
    B, Nc, C = q.shape
    Ns = k.shape[1]
    Vc = v.shape[2]
    Tnc = _pick_tile(Nc, 512)
    Tns = _pick_tile(Ns, 1024)
    key = (B, Nc, Ns, C, Vc, Tnc, Tns, with_stats)
    if key not in _attn_cache:
        kern = functools.partial(_flash_attn_kernel, C=C, with_stats=with_stats)
        if with_stats:
            out_shape = (jax.ShapeDtypeStruct((B, Nc, C), jnp.float32),
                         jax.ShapeDtypeStruct((B, Nc, C), jnp.float32))
            out_specs = (pl.BlockSpec((1, Tnc, C), lambda b, i, j: (b, i, 0)),
                         pl.BlockSpec((1, Tnc, C), lambda b, i, j: (b, i, 0)))
            out_bytes = 2 * 2 * Tnc * C * 4
        else:
            out_shape = jax.ShapeDtypeStruct((B, Nc, C), jnp.bfloat16)
            out_specs = pl.BlockSpec((1, Tnc, C), lambda b, i, j: (b, i, 0))
            out_bytes = 2 * Tnc * C * 2
        blk = 2 * (Tnc * C + Tns * C + Tns * Vc) * 2
        scr = 4 * (Tnc * (Vc + 2) + 2 * Tnc * Tns)
        limit = int(min(_VMEM_LIMIT_CAP,
                        max(16 << 20, 2 * (blk + out_bytes + scr))))
        _attn_cache[key] = pl.pallas_call(
            kern,
            out_shape=out_shape,
            grid=(B, Nc // Tnc, Ns // Tns),
            in_specs=[pl.BlockSpec((1, Tnc, C), lambda b, i, j: (b, i, 0)),
                      pl.BlockSpec((1, Tns, C), lambda b, i, j: (b, j, 0)),
                      pl.BlockSpec((1, Tns, Vc), lambda b, i, j: (b, j, 0))],
            out_specs=out_specs,
            scratch_shapes=[pltpu.VMEM((Tnc, 1), jnp.float32),
                            pltpu.VMEM((Tnc, 1), jnp.float32),
                            pltpu.VMEM((Tnc, Vc), jnp.float32)],
            compiler_params=pltpu.CompilerParams(
                dimension_semantics=("parallel", "parallel", "arbitrary"),
                vmem_limit_bytes=limit),
        )
    return _attn_cache[key](q, k, v)


def aessa_attention(Fm, Gm, Sf):
    sf32 = Sf.astype(jnp.float32)
    vcat = jnp.concatenate([sf32, sf32 * sf32], axis=-1).astype(jnp.bfloat16)
    return _flash_attention(Fm, Gm, vcat, with_stats=True)


def safusion_attention(f1, f2, f3):
    return _flash_attention(f1, f2, f3, with_stats=False)


# ----------------------------------------------------------------------------
# JAX glue (padding / pooling / upsampling / parameter setup)
# ----------------------------------------------------------------------------

def reflect_pad1(x):
    return jnp.pad(x, ((0, 0), (1, 1), (1, 1), (0, 0)), mode='reflect')


def maxpool2x2(x):
    B, H, W, C = x.shape
    return x.reshape(B, H // 2, 2, W // 2, 2, C).max(axis=(2, 4))


def upsample_nearest(x, out_hw):
    B, H, W, C = x.shape
    oh, ow = out_hw
    if oh % H == 0 and ow % W == 0:                       # integer repeat (fast path)
        rh, rw = oh // H, ow // W
        y = jnp.broadcast_to(x[:, :, None, :, None, :], (B, H, rh, W, rw, C))
        return y.reshape(B, oh, ow, C)
    ridx = (jnp.arange(oh) * H // oh).astype(jnp.int32)   # general nearest (incl. down)
    cidx = (jnp.arange(ow) * W // ow).astype(jnp.int32)
    return x[:, ridx][:, :, cidx]


def conv_params(key, kh, kw, cin, cout):
    fan_in = kh * kw * cin
    w = jax.random.normal(key, (kh, kw, cin, cout), jnp.float32) * jnp.sqrt(2.0 / fan_in)
    return w.astype(jnp.bfloat16), jnp.zeros((cout,), jnp.float32)


def rpconv(x, wb, relu=True):
    w, b = wb
    return conv2d(reflect_pad1(x), w, b, relu=relu)


# --------------------------- encoder (VGG-19 slices) -------------------------

def make_encoder_params(key):
    ks = jax.random.split(key, 14)
    cfg = [('conv0', 1, 3, 3), ('1_1', 3, 3, 64), ('1_2', 3, 64, 64),
           ('2_1', 3, 64, 128), ('2_2', 3, 128, 128), ('3_1', 3, 128, 256),
           ('3_2', 3, 256, 256), ('3_3', 3, 256, 256), ('3_4', 3, 256, 256),
           ('4_1', 3, 256, 512), ('4_2', 3, 512, 512), ('4_3', 3, 512, 512),
           ('4_4', 3, 512, 512), ('5_1', 3, 512, 512)]
    return {name: conv_params(k, ksz, ksz, ci, co)
            for k, (name, ksz, ci, co) in zip(ks, cfg)}


def enc_1(p, x):
    x = conv2d(x, *p['conv0'], relu=False)
    return rpconv(x, p['1_1'])


def enc_2(p, x):
    x = rpconv(x, p['1_2'])
    return rpconv(maxpool2x2(x), p['2_1'])


def enc_3(p, x):
    x = rpconv(x, p['2_2'])
    return rpconv(maxpool2x2(x), p['3_1'])


def enc_4(p, x):
    x = rpconv(x, p['3_2'])
    x = rpconv(x, p['3_3'])
    x = rpconv(x, p['3_4'])
    return rpconv(maxpool2x2(x), p['4_1'])


def enc_5(p, x):
    x = rpconv(x, p['4_2'])
    x = rpconv(x, p['4_3'])
    x = rpconv(x, p['4_4'])
    return rpconv(maxpool2x2(x), p['5_1'])


def encode_with_intermediate(p, x):
    feats = []
    for fn in (enc_1, enc_2, enc_3, enc_4, enc_5):
        x = fn(p, x)
        feats.append(x)
    return feats


# --------------------------------- decoder ----------------------------------

def make_decoder_params(key):
    ks = jax.random.split(key, 9)
    chans = [(512, 256), (256, 256), (256, 256), (256, 256), (256, 128),
             (128, 128), (128, 64), (64, 64), (64, 3)]
    return [conv_params(k, 3, 3, ci, co) for k, (ci, co) in zip(ks, chans)]


def decoder_forward(p, x):
    x = rpconv(x, p[0])
    x = upsample_nearest(x, (x.shape[1] * 2, x.shape[2] * 2))
    x = rpconv(x, p[1])
    x = rpconv(x, p[2])
    x = rpconv(x, p[3])
    x = rpconv(x, p[4])
    x = upsample_nearest(x, (x.shape[1] * 2, x.shape[2] * 2))
    x = rpconv(x, p[5])
    x = rpconv(x, p[6])
    x = upsample_nearest(x, (x.shape[1] * 2, x.shape[2] * 2))
    x = rpconv(x, p[7])
    x = rpconv(x, p[8], relu=False)
    return x


# -------------------------- SA_fusion / AesSA / Transform --------------------
# TODO(synk): the 1x1 convs (f/g/h, f1/f2/f3) could be fused into the attention
# pallas_call to cut HBM round trips further.

def make_sa_fusion_params(key, c):
    ks = jax.random.split(key, 4)
    return {n: conv_params(k, 1, 1, c, c) for n, k in zip(['f1', 'f2', 'f3', 'frs'], ks)}


def sa_fusion_forward(p, x_fcc, x_fss):
    B, Hc, Wc, C = x_fcc.shape
    _, Hs, Ws, _ = x_fss.shape
    f1 = conv2d(x_fcc, *p['f1']).reshape(B, Hc * Wc, C)
    f2 = conv2d(x_fss, *p['f2']).reshape(B, Hs * Ws, C)
    f3 = conv2d(x_fss, *p['f3']).reshape(B, Hs * Ws, C)
    x_frs = safusion_attention(f1, f2, f3).reshape(B, Hc, Wc, C)
    x_frs = conv2d(x_frs, *p['frs'])
    return x_frs + x_fcc


def make_aessa_params(key, c):
    ks = jax.random.split(key, 4)
    # NOTE: d/e/o1/out_conv1/out_conv2 exist in the reference __init__ but are
    # unused in forward, so they are omitted here.
    return {'sa': make_sa_fusion_params(ks[0], c),
            'f': conv_params(ks[1], 1, 1, c, c),
            'g': conv_params(ks[2], 1, 1, c, c),
            'h': conv_params(ks[3], 1, 1, c, c)}


def aessa_forward(p, content, style, aesthetic_feats):
    if aesthetic_feats is not None:
        style_key = sa_fusion_forward(p['sa'], style, aesthetic_feats)
    else:
        style_key = mean_variance_norm(style)
    content_norm = mean_variance_norm(content)
    F = conv2d(content_norm, *p['f'])
    G = conv2d(style_key, *p['g'])
    Hh = conv2d(style, *p['h'])
    B, h, w, C = F.shape
    _, hs, ws, _ = G.shape
    mean, std = aessa_attention(F.reshape(B, h * w, C),
                                G.reshape(B, hs * ws, C),
                                Hh.reshape(B, hs * ws, C))
    mean = mean.reshape(B, h, w, C)
    std = std.reshape(B, h, w, C)
    return std * content_norm.astype(jnp.float32) + mean


def make_transform_params(key, c=512):
    ks = jax.random.split(key, 3)
    return {'a41': make_aessa_params(ks[0], c),
            'a51': make_aessa_params(ks[1], c),
            'merge': conv_params(ks[2], 3, 3, c, c)}


def transform_forward(p, c41, s41, c51, s51, aesthetic_feats=None):
    if aesthetic_feats is not None:
        a41 = aessa_forward(p['a41'], c41, s41,
                            upsample_nearest(aesthetic_feats, (s41.shape[1], s41.shape[2])))
        a51 = aessa_forward(p['a51'], c51, s51,
                            upsample_nearest(aesthetic_feats, (s51.shape[1], s51.shape[2])))
    else:
        a41 = aessa_forward(p['a41'], c41, s41, None)
        a51 = aessa_forward(p['a51'], c51, s51, None)
    merged = a41 + upsample_nearest(a51, (c41.shape[1], c41.shape[2]))
    return conv2d(reflect_pad1(merged), *p['merge'], relu=False)


# ------------------------------ discriminator --------------------------------
# TODO(synk): the discriminator module is a constructor argument with no
# definition in the reference; a minimal conv discriminator with LSGAN-style
# MSE compute_loss is used (it must emit 512-channel features for SA_fusion).

def make_disc_params(key):
    ks = jax.random.split(key, 3)
    return {'c1': conv_params(ks[0], 1, 1, 3, 64),
            'c2': conv_params(ks[1], 1, 1, 64, 512),
            'head': conv_params(ks[2], 1, 1, 512, 1)}


def disc_forward(p, x):
    h = conv2d(x, *p['c1'], relu=True)
    h = maxpool2x2(maxpool2x2(maxpool2x2(h)))
    feats = conv2d(h, *p['c2'], relu=True)
    logits = conv2d(feats, *p['head'], relu=False)
    return feats, logits


def disc_compute_loss(p, x, target):
    _, logits = disc_forward(p, x)
    return mse_loss(logits, jnp.full(logits.shape, float(target), jnp.float32))


# --------------------------------- losses ------------------------------------

def calc_content_loss(a, b, norm=False):
    if norm:
        return mse_loss(mean_variance_norm(a), mean_variance_norm(b))
    return mse_loss(a, b)


def calc_style_loss(a, b):
    am, asd = calc_mean_std(a)
    bm, bsd = calc_mean_std(b)
    return mse_loss(am, bm) + mse_loss(asd, bsd)


# --------------------------------- Net ---------------------------------------

def make_net_params(key):
    ks = jax.random.split(key, 4)
    return {'enc': make_encoder_params(ks[0]),
            'dec': make_decoder_params(ks[1]),
            'transform': make_transform_params(ks[2]),
            'disc': make_disc_params(ks[3])}


def net_forward(params, content, style, aesthetic=True):
    enc_p, dec_p = params['enc'], params['dec']
    t_p, d_p = params['transform'], params['disc']

    style_feats = encode_with_intermediate(enc_p, style)
    content_feats = encode_with_intermediate(enc_p, content)

    # aesthetic branch (forward only makes sense with aesthetic=True)
    aesthetic_s_feats, _ = disc_forward(d_p, style)
    stylized = transform_forward(t_p, content_feats[3], style_feats[3],
                                 content_feats[4], style_feats[4], aesthetic_s_feats)
    g_t = decoder_forward(dec_p, stylized)
    g_t_feats = encode_with_intermediate(enc_p, g_t)

    loss_c = (calc_content_loss(g_t_feats[3], content_feats[3], norm=True)
              + calc_content_loss(g_t_feats[4], content_feats[4], norm=True))
    loss_s = calc_style_loss(g_t_feats[0], style_feats[0])
    for i in range(1, 5):
        loss_s = loss_s + calc_style_loss(g_t_feats[i], style_feats[i])

    loss_gan_d = (disc_compute_loss(d_p, style, 1)
                  + disc_compute_loss(d_p, jax.lax.stop_gradient(g_t), 0))
    loss_gan_g = disc_compute_loss(d_p, g_t, 1)
    aesthetic_g_t_feats, _ = disc_forward(d_p, g_t)
    aesthetic_s_feats2, _ = disc_forward(d_p, style)
    loss_aesthetic = calc_style_loss(aesthetic_g_t_feats, aesthetic_s_feats2)

    Icc = decoder_forward(dec_p, transform_forward(
        t_p, content_feats[3], content_feats[3], content_feats[4], content_feats[4], None))
    Iss = decoder_forward(dec_p, transform_forward(
        t_p, style_feats[3], style_feats[3], style_feats[4], style_feats[4], None))
    l_identity1 = calc_content_loss(Icc, content) + calc_content_loss(Iss, style)
    Fcc = encode_with_intermediate(enc_p, Icc)
    Fss = encode_with_intermediate(enc_p, Iss)
    l_identity2 = (calc_content_loss(Fcc[0], content_feats[0])
                   + calc_content_loss(Fss[0], style_feats[0]))
    for i in range(1, 5):
        l_identity2 = (l_identity2 + calc_content_loss(Fcc[i], content_feats[i])
                       + calc_content_loss(Fss[i], style_feats[i]))
    l_identity = 50.0 * l_identity1 + l_identity2

    return g_t, loss_c, loss_s, loss_gan_d, loss_gan_g, l_identity, loss_aesthetic


# ------------------------------------------------------------------------------

if __name__ == "__main__":
    root = jax.random.PRNGKey(0)
    k_params, k_content, k_style = jax.random.split(root, 3)

    params = make_net_params(k_params)

    B, H, W = 2, 32, 32          # small image; enc_4 -> 4x4x512, enc_5 -> 2x2x512
    content = jax.random.uniform(k_content, (B, H, W, 3), jnp.float32)
    style = jax.random.uniform(k_style, (B, H, W, 3), jnp.float32)

    outs = net_forward(params, content, style, aesthetic=True)
    outs = jax.block_until_ready(outs)

    g_t = outs[0]
    assert g_t.shape == (B, H, W, 3)
    for v in outs[1:]:
        assert bool(jnp.isfinite(v))
    print("KERNEL_OK")
</pallas_src>

<mosaic_0001>
module attributes {stable_mosaic.version = 11 : i64} {
  func.func @_mm_kernel(%arg0: i32, %arg1: memref<512x3xbf16, #tpu.memory_space<vmem>>, %arg2: memref<3x3xbf16, #tpu.memory_space<vmem>>, %arg3: memref<1x3xf32, #tpu.memory_space<vmem>>, %arg4: memref<512x3xbf16, #tpu.memory_space<vmem>>) attributes {dimension_semantics = [#tpu.dimension_semantics<parallel>], iteration_bounds = array<i64: 4>, scalar_prefetch = 0 : i64, scratch_operands = 0 : i64, tpu.core_type = #tpu.core_type<tc>, window_params = [{transform_indices = @transform_0, window_bounds = array<i64: 512, 3>}, {pipeline_mode = #tpu.pipeline_mode<synchronous>, transform_indices = @transform_1, window_bounds = array<i64: 3, 3>}, {pipeline_mode = #tpu.pipeline_mode<synchronous>, transform_indices = @transform_2, window_bounds = array<i64: 1, 3>}, {transform_indices = @transform_3, window_bounds = array<i64: 512, 3>}]} {
    %c0 = arith.constant 0 : index
    %c0_0 = arith.constant 0 : index
    %0 = vector.load %arg1[%c0, %c0_0] : memref<512x3xbf16, #tpu.memory_space<vmem>>, vector<512x3xbf16>
    %c0_1 = arith.constant 0 : index
    %c0_2 = arith.constant 0 : index
    %1 = vector.load %arg2[%c0_1, %c0_2] : memref<3x3xbf16, #tpu.memory_space<vmem>>, vector<3x3xbf16>
    %cst = arith.constant dense<0.000000e+00> : vector<512x3xf32>
    %2 = tpu.matmul %0, %1, %cst {dimension_numbers = #tpu.dot_dimension_numbers<[1], [0], [0], [1], [0, 0, 1, 1], [], []>} : vector<512x3xbf16>, vector<3x3xbf16>, vector<512x3xf32> -> vector<512x3xf32>
    %c0_3 = arith.constant 0 : index
    %c0_4 = arith.constant 0 : index
    %3 = vector.load %arg3[%c0_3, %c0_4] : memref<1x3xf32, #tpu.memory_space<vmem>>, vector<1x3xf32>
    %4 = vector.broadcast %3 : vector<1x3xf32> to vector<512x3xf32>
    %5 = arith.addf %2, %4 : vector<512x3xf32>
    %6 = arith.truncf %5 : vector<512x3xf32> to vector<512x3xbf16>
    %c0_5 = arith.constant 0 : index
    %c0_6 = arith.constant 0 : index
    %7 = vector.load %arg4[%c0_5, %c0_6] : memref<512x3xbf16, #tpu.memory_space<vmem>>, vector<512x3xbf16>
    tpu.vector_store %arg4[%c0_5, %c0_6], %6 {strides = array<i32>} : memref<512x3xbf16, #tpu.memory_space<vmem>>, vector<512x3xbf16>,
    return
  }
  func.func @transform_0(%arg0: i32) -> (i32, i32) {
    %c0_i32 = arith.constant 0 : i32
    %c0_i32_0 = arith.constant 0 : i32
    return %arg0, %c0_i32 : i32, i32
  }
  func.func @transform_1(%arg0: i32) -> (i32, i32) {
    %c0_i32 = arith.constant 0 : i32
    %c0_i32_0 = arith.constant 0 : i32
    %c0_i32_1 = arith.constant 0 : i32
    return %c0_i32, %c0_i32_0 : i32, i32
  }
  func.func @transform_2(%arg0: i32) -> (i32, i32) {
    %c0_i32 = arith.constant 0 : i32
    %c0_i32_0 = arith.constant 0 : i32
    %c0_i32_1 = arith.constant 0 : i32
    return %c0_i32, %c0_i32_0 : i32, i32
  }
  func.func @transform_3(%arg0: i32) -> (i32, i32) {
    %c0_i32 = arith.constant 0 : i32
    %c0_i32_0 = arith.constant 0 : i32
    return %arg0, %c0_i32 : i32, i32
  }
}

</mosaic_0001>

<bundles_post_ra>
// kernel: tpu_custom_call.1
= control target key start
LH: loop header
LB: loop body
LE: loop exit
PB: predicated region body
PF: predicated region fallthrough
CT: control target
= control target key end

     0   :  { %s1552_s12 = smov 0   ;;  %s1844_s0 = inlined_call_operand.vmem [shape: bf16[2048,3], index: 0, kind: input, shape index: {}]   ;;  %s1845_s1 = inlined_call_operand.vmem [shape: bf16[3,3], index: 1, kind: input, shape index: {}]   ;;  %s1846_s2 = inlined_call_operand.vmem [shape: f32[1,3], index: 2, kind: input, shape index: {}]   ;;  %s1847_s3 = inlined_call_operand.vmem [shape: bf16[2048,3], index: 3, kind: output, shape index: {}]  }
   0x1 LB: > { %s1177_s13 = sadd.s32 4294967295, %s1529_s12   ;;  %p1181_p0 = scmp.ge.s32.totalorder %s1529_s12, 1  ;;  %s1529_s12 = sphi %s1552_s12, %s13_s12  }
   0x2   : > { %p138_p1 = scmp.lt.s32.totalorder %s1529_s12, 5 }
   0x4   : > { %p139_p2 = pnand %p1181_p0, %p138_p1 }
   0x5   : > { %v239_v0 = vld [vmem:[%s1845_s1] sm:$0x3] (!%p139_p2)  ;;  %vm504_vm0 = vcmask (!%p139_p2), 1040384   ;;  %vm505_vm1 = vcmask (!%p139_p2), 1041408   ;;  %s1182_s16 = sshll.u32 (!%p139_p2), %s1177_s13, 6  ;;  %v1531_v1 = vmov (!%p139_p2), 65535  }
   0x6   : > { %142 = sbr.rel (%p139_p2) target bundleno = 295 (0x127), region = 32  ;;  %v506_v2 = vsel (!%p139_p2), %vm504_vm0, 4294967295, %v1531_v1  ;;  %p163_p3 = scmp.lt.s32.totalorder (!%p139_p2), %s1182_s16, 255  ;;  %vm407_vm2 = vcmask (!%p139_p2), 23552   ;;  %v1640_v37 = vld [vmem:[%s1846_s2] ss:$0 sm:$0xff] (!%p139_p2) }
   0x7   : > { %v507_v3 = vsel (!%p139_p2), %vm505_vm1, %v506_v2, 0  ;;  %vm1056_vm3 = vcmask (!%p139_p2), 19456  }
   0x8   : > { %v509_v4 = vand.u32 (!%p139_p2), %v507_v3, %v239_v0 }
   0xa   : > { %1414 = vmatprep.subr.bf16.mxu0 (!%p139_p2), %v509_v4  ;;  %1480 = vmatprep.subr.bf16.mxu1 (!%p139_p2), %v509_v4 }
   0xb   : > { %1415 = vmatpush3.bf16.msra.mxu0 (!%p139_p2), %v509_v4  ;;  %1481 = vmatpush3.bf16.msra.mxu1 (!%p139_p2), %v509_v4 }
   0xd   : > { %s1849_s16 = smov (!%p163_p3, %s1182_s16), 255 }
   0xe   : > { %s1183_s17 = sshll.u32 %s1849_s16, 2 }
   0xf   : > { %s1571_s20 = scalar_lea.vmem %s1844_s0, %s1183_s17  ;;  %s1648_s25 = scalar_lea.vmem %s1847_s3, %s1183_s17 }
  0x10   : > { %v1491_v5 = vld [vmem:[%s1571_s20] sm:$0xff]   ;;  %v1493_v7 = vld [vmem:[%s1571_s20 + $0x8] sm:$0xff]   ;;  %v1495_v9 = vld [vmem:[%s1571_s20 + $0x10] sm:$0xff]  }
  0x11   : > { %v1492_v6 = vld [vmem:[%s1571_s20 + $0x80] sm:$0xff]   ;;  %1416 = vmatprep.mubr.msk.bf16.mxu0 %vm407_vm2, %v1491_v5  ;;  %v1494_v8 = vld [vmem:[%s1571_s20 + $0x88] sm:$0xff]   ;;  %v1496_v10 = vld [vmem:[%s1571_s20 + $0x90] sm:$0xff]  }
  0x12   : > { %1448 = vmatprep.mubr.msk.bf16.mxu1 %vm407_vm2, %v1492_v6  ;;  %1417 = vmatmul.mubr.msk.bf16.vlgmr.msra.gmra.mrb[0].mxu0 %vm407_vm2, %v1493_v7  ;;  %v1497_v11 = vld [vmem:[%s1571_s20 + $0x18] sm:$0xff]   ;;  %v1499_v13 = vld [vmem:[%s1571_s20 + $0x20] sm:$0xff]   ;;  %v1501_v15 = vld [vmem:[%s1571_s20 + $0x28] sm:$0xff]  }
  0x13   : > { %1449 = vmatmul.mubr.msk.bf16.vlgmr.msra.gmra.mrb[0].mxu1 %vm407_vm2, %v1494_v8  ;;  %1420 = vmatprep.mubr.msk.bf16.mxu0 %vm407_vm2, %v1495_v9  ;;  %v1498_v12 = vld [vmem:[%s1571_s20 + $0x98] sm:$0xff]   ;;  %v1500_v14 = vld [vmem:[%s1571_s20 + $0xa0] sm:$0xff]   ;;  %v1502_v16 = vld [vmem:[%s1571_s20 + $0xa8] sm:$0xff]  }
  0x14   : > { %1452 = vmatprep.mubr.msk.bf16.mxu1 %vm407_vm2, %v1496_v10  ;;  %v1503_v17 = vld [vmem:[%s1571_s20 + $0x30] sm:$0xff]   ;;  %v1505_v19 = vld [vmem:[%s1571_s20 + $0x38] sm:$0xff]   ;;  %v1507_v21 = vld [vmem:[%s1571_s20 + $0x40] sm:$0xff]  }
  0x15   : > { %v1504_v18 = vld [vmem:[%s1571_s20 + $0xb0] sm:$0xff]   ;;  %v1506_v20 = vld [vmem:[%s1571_s20 + $0xb8] sm:$0xff]   ;;  %v1508_v22 = vld [vmem:[%s1571_s20 + $0xc0] sm:$0xff]  }
  0x16   : > { %v1509_v23 = vld [vmem:[%s1571_s20 + $0x48] sm:$0xff]   ;;  %v1511_v25 = vld [vmem:[%s1571_s20 + $0x50] sm:$0xff]   ;;  %v1513_v27 = vld [vmem:[%s1571_s20 + $0x58] sm:$0xff]  }
  0x17   : > { %v1510_v24 = vld [vmem:[%s1571_s20 + $0xc8] sm:$0xff]   ;;  %v1512_v26 = vld [vmem:[%s1571_s20 + $0xd0] sm:$0xff]   ;;  %v1514_v28 = vld [vmem:[%s1571_s20 + $0xd8] sm:$0xff]  }
  0x18   : > { %v1515_v29 = vld [vmem:[%s1571_s20 + $0x60] sm:$0xff]   ;;  %v1517_v31 = vld [vmem:[%s1571_s20 + $0x68] sm:$0xff]   ;;  %v1519_v33 = vld [vmem:[%s1571_s20 + $0x70] sm:$0xff]  }
  0x19   : > { %v1516_v30 = vld [vmem:[%s1571_s20 + $0xe0] sm:$0xff]   ;;  %v1518_v32 = vld [vmem:[%s1571_s20 + $0xe8] sm:$0xff]   ;;  %v1520_v34 = vld [vmem:[%s1571_s20 + $0xf0] sm:$0xff]  }
  0x1a   : > { %1421 = vmatmul.mubr.msk.bf16.gmra.mrb[4].mxu0 %vm407_vm2, %v1497_v11  ;;  %v1521_v35 = vld [vmem:[%s1571_s20 + $0x78] sm:$0xff]  }
  0x1b   : > { %1453 = vmatmul.mubr.msk.bf16.gmra.mrb[4].mxu1 %vm407_vm2, %v1498_v12  ;;  %1424 = vmatprep.mubr.msk.bf16.mxu0 %vm407_vm2, %v1499_v13  ;;  %v1522_v36 = vld [vmem:[%s1571_s20 + $0xf8] sm:$0xff]  }
  0x1c   : > { %1456 = vmatprep.mubr.msk.bf16.mxu1 %vm407_vm2, %v1500_v14 }
  0x22   : > { %1425 = vmatmul.mubr.msk.bf16.gmra.mrb[8].mxu0 %vm407_vm2, %v1501_v15 }
  0x23   : > { %1457 = vmatmul.mubr.msk.bf16.gmra.mrb[8].mxu1 %vm407_vm2, %v1502_v16  ;;  %1428 = vmatprep.mubr.msk.bf16.mxu0 %vm407_vm2, %v1503_v17 }
  0x24   : > { %1460 = vmatprep.mubr.msk.bf16.mxu1 %vm407_vm2, %v1504_v18 }
  0x2a   : > { %1429 = vmatmul.mubr.msk.bf16.gmra.mrb[12].mxu0 %vm407_vm2, %v1505_v19 }
  0x2b   : > { %1461 = vmatmul.mubr.msk.bf16.gmra.mrb[12].mxu1 %vm407_vm2, %v1506_v20  ;;  %1432 = vmatprep.mubr.msk.bf16.mxu0 %vm407_vm2, %v1507_v21 }
  0x2c   : > { %1464 = vmatprep.mubr.msk.bf16.mxu1 %vm407_vm2, %v1508_v22 }
  0x32   : > { %1433 = vmatmul.mubr.msk.bf16.gmra.mrb[16].mxu0 %vm407_vm2, %v1509_v23 }
  0x33   : > { %1465 = vmatmul.mubr.msk.bf16.gmra.mrb[16].mxu1 %vm407_vm2, %v1510_v24  ;;  %1436 = vmatprep.mubr.msk.bf16.mxu0 %vm407_vm2, %v1511_v25 }
  0x34   : > { %1468 = vmatprep.mubr.msk.bf16.mxu1 %vm407_vm2, %v1512_v26 }
  0x3a   : > { %1437 = vmatmul.mubr.msk.bf16.gmra.mrb[20].mxu0 %vm407_vm2, %v1513_v27 }
  0x3b   : > { %1469 = vmatmul.mubr.msk.bf16.gmra.mrb[20].mxu1 %vm407_vm2, %v1514_v28  ;;  %1440 = vmatprep.mubr.msk.bf16.mxu0 %vm407_vm2, %v1515_v29 }
  0x3c   : > { %1472 = vmatprep.mubr.msk.bf16.mxu1 %vm407_vm2, %v1516_v30 }
  0x42   : > { %1441 = vmatmul.mubr.msk.bf16.gmra.mrb[24].mxu0 %vm407_vm2, %v1517_v31 }
  0x43   : > { %1473 = vmatmul.mubr.msk.bf16.gmra.mrb[24].mxu1 %vm407_vm2, %v1518_v32  ;;  %1444 = vmatprep.mubr.msk.bf16.mxu0 %vm407_vm2, %v1519_v33 }
  0x44   : > { %1476 = vmatprep.mubr.msk.bf16.mxu1 %vm407_vm2, %v1520_v34 }
  0x4a   : > { %1445 = vmatmul.mubr.msk.bf16.gmra.mrb[28].mxu0 %vm407_vm2, %v1521_v35 }
  0x4b   : > { %1477 = vmatmul.mubr.msk.bf16.gmra.mrb[28].mxu1 %vm407_vm2, %v1522_v36 }
  0xe5   : > { %v1418_v38 = vpop.f32.mrb[0].mxu0 }
  0xe6   : > { %v554_v39 = vadd.f32 %v1418_v38, %v1640_v37  ;;  %v1450_v40 = vpop.f32.mrb[0].mxu1  ;;  %v545_v41 = vpop.f32.mrb[1].mxu0 }
  0xe7   : > { %v682_v42 = vadd.f32 %v1450_v40, %v1640_v37  ;;  %v546_v43 = vadd.f32 %v1640_v37, %v545_v41  ;;  %v673_v44 = vpop.f32.mrb[1].mxu1  ;;  %v1419_v45 = vpop.f32.mrb[2].mxu0 }
  0xe8   : > { %v1319_v46 = vpack.c.bf16 %v554_v39, %v554_v39  ;;  %v674_v47 = vadd.f32 %v1640_v37, %v673_v44  ;;  %v557_v48 = vadd.f32 %v1419_v45, %v1640_v37  ;;  %v1451_v49 = vpop.f32.mrb[2].mxu1  ;;  %v548_v50 = vpop.f32.mrb[3].mxu0 }
  0xe9   : > { %v1351_v51 = vpack.c.bf16 %v682_v42, %v682_v42  ;;  %v1317_v52 = vpack.c.bf16 %v546_v43, %v546_v43  ;;  %v685_v53 = vadd.f32 %v1451_v49, %v1640_v37  ;;  %v549_v54 = vadd.f32 %v1640_v37, %v548_v50  ;;  %v676_v55 = vpop.f32.mrb[3].mxu1 }
  0xea   : > { %1059 = vst.msk [vmem:[%s1648_s25 + $0x8] sm:$0xf] %vm1056_vm3, %v1319_v46  ;;  %v1349_v56 = vpack.c.bf16 %v674_v47, %v674_v47  ;;  %v1320_v57 = vpack.c.bf16 %v557_v48, %v557_v48  ;;  %v677_v58 = vadd.f32 %v1640_v37, %v676_v55 }
  0xeb   : > { %1091 = vst.msk [vmem:[%s1648_s25 + $0x88] sm:$0xf] %vm1056_vm3, %v1351_v51  ;;  %1057 = vst.msk [vmem:[%s1648_s25] sm:$0xf] %vm1056_vm3, %v1317_v52  ;;  %v1352_v59 = vpack.c.bf16 %v685_v53, %v685_v53  ;;  %v1318_v60 = vpack.c.bf16 %v549_v54, %v549_v54 }
  0xec   : > { %1089 = vst.msk [vmem:[%s1648_s25 + $0x80] sm:$0xf] %vm1056_vm3, %v1349_v56  ;;  %1060 = vst.msk [vmem:[%s1648_s25 + $0xc] sm:$0xf] %vm1056_vm3, %v1320_v57  ;;  %v1350_v61 = vpack.c.bf16 %v677_v58, %v677_v58 }
  0xed   : > { %1092 = vst.msk [vmem:[%s1648_s25 + $0x8c] sm:$0xf] %vm1056_vm3, %v1352_v59  ;;  %1058 = vst.msk [vmem:[%s1648_s25 + $0x4] sm:$0xf] %vm1056_vm3, %v1318_v60  ;;  %v1422_v62 = vpop.f32.mrb[4].mxu0 }
  0xee   : > { %1090 = vst.msk [vmem:[%s1648_s25 + $0x84] sm:$0xf] %vm1056_vm3, %v1350_v61  ;;  %v570_v63 = vadd.f32 %v1422_v62, %v1640_v37  ;;  %v1454_v0 = vpop.f32.mrb[4].mxu1  ;;  %v561_v1 = vpop.f32.mrb[5].mxu0 }
  0xef   : > { %v698_v2 = vadd.f32 %v1454_v0, %v1640_v37  ;;  %v562_v3 = vadd.f32 %v1640_v37, %v561_v1  ;;  %v689_v4 = vpop.f32.mrb[5].mxu1  ;;  %v1423_v5 = vpop.f32.mrb[6].mxu0 }
  0xf0   : > { %v1323_v6 = vpack.c.bf16 %v570_v63, %v570_v63  ;;  %v690_v7 = vadd.f32 %v1640_v37, %v689_v4  ;;  %v573_v8 = vadd.f32 %v1423_v5, %v1640_v37  ;;  %v1455_v9 = vpop.f32.mrb[6].mxu1  ;;  %v564_v10 = vpop.f32.mrb[7].mxu0 }
  0xf1   : > { %v1355_v11 = vpack.c.bf16 %v698_v2, %v698_v2  ;;  %v1321_v12 = vpack.c.bf16 %v562_v3, %v562_v3  ;;  %v701_v13 = vadd.f32 %v1455_v9, %v1640_v37  ;;  %v565_v14 = vadd.f32 %v1640_v37, %v564_v10  ;;  %v692_v15 = vpop.f32.mrb[7].mxu1 }
  0xf2   : > { %1063 = vst.msk [vmem:[%s1648_s25 + $0x18] sm:$0xf] %vm1056_vm3, %v1323_v6  ;;  %v1353_v16 = vpack.c.bf16 %v690_v7, %v690_v7  ;;  %v1324_v17 = vpack.c.bf16 %v573_v8, %v573_v8  ;;  %v693_v18 = vadd.f32 %v1640_v37, %v692_v15 }
  0xf3   : > { %1095 = vst.msk [vmem:[%s1648_s25 + $0x98] sm:$0xf] %vm1056_vm3, %v1355_v11  ;;  %1061 = vst.msk [vmem:[%s1648_s25 + $0x10] sm:$0xf] %vm1056_vm3, %v1321_v12  ;;  %v1356_v19 = vpack.c.bf16 %v701_v13, %v701_v13  ;;  %v1322_v20 = vpack.c.bf16 %v565_v14, %v565_v14 }
  0xf4   : > { %1093 = vst.msk [vmem:[%s1648_s25 + $0x90] sm:$0xf] %vm1056_vm3, %v1353_v16  ;;  %1064 = vst.msk [vmem:[%s1648_s25 + $0x1c] sm:$0xf] %vm1056_vm3, %v1324_v17  ;;  %v1354_v21 = vpack.c.bf16 %v693_v18, %v693_v18 }
  0xf5   : > { %1096 = vst.msk [vmem:[%s1648_s25 + $0x9c] sm:$0xf] %vm1056_vm3, %v1356_v19  ;;  %1062 = vst.msk [vmem:[%s1648_s25 + $0x14] sm:$0xf] %vm1056_vm3, %v1322_v20  ;;  %v1426_v22 = vpop.f32.mrb[8].mxu0 }
  0xf6   : > { %1094 = vst.msk [vmem:[%s1648_s25 + $0x94] sm:$0xf] %vm1056_vm3, %v1354_v21  ;;  %v586_v23 = vadd.f32 %v1426_v22, %v1640_v37  ;;  %v1458_v24 = vpop.f32.mrb[8].mxu1  ;;  %v577_v25 = vpop.f32.mrb[9].mxu0 }
  0xf7   : > { %v714_v26 = vadd.f32 %v1458_v24, %v1640_v37  ;;  %v578_v27 = vadd.f32 %v1640_v37, %v577_v25  ;;  %v705_v28 = vpop.f32.mrb[9].mxu1  ;;  %v1427_v29 = vpop.f32.mrb[10].mxu0 }
  0xf8   : > { %v1327_v30 = vpack.c.bf16 %v586_v23, %v586_v23  ;;  %v706_v31 = vadd.f32 %v1640_v37, %v705_v28  ;;  %v589_v32 = vadd.f32 %v1427_v29, %v1640_v37  ;;  %v1459_v33 = vpop.f32.mrb[10].mxu1  ;;  %v580_v34 = vpop.f32.mrb[11].mxu0 }
  0xf9   : > { %v1359_v35 = vpack.c.bf16 %v714_v26, %v714_v26  ;;  %v1325_v36 = vpack.c.bf16 %v578_v27, %v578_v27  ;;  %v717_v38 = vadd.f32 %v1459_v33, %v1640_v37  ;;  %v581_v39 = vadd.f32 %v1640_v37, %v580_v34  ;;  %v708_v40 = vpop.f32.mrb[11].mxu1 }
  0xfa   : > { %1067 = vst.msk [vmem:[%s1648_s25 + $0x28] sm:$0xf] %vm1056_vm3, %v1327_v30  ;;  %v1357_v41 = vpack.c.bf16 %v706_v31, %v706_v31  ;;  %v1328_v42 = vpack.c.bf16 %v589_v32, %v589_v32  ;;  %v709_v43 = vadd.f32 %v1640_v37, %v708_v40 }
  0xfb   : > { %1099 = vst.msk [vmem:[%s1648_s25 + $0xa8] sm:$0xf] %vm1056_vm3, %v1359_v35  ;;  %1065 = vst.msk [vmem:[%s1648_s25 + $0x20] sm:$0xf] %vm1056_vm3, %v1325_v36  ;;  %v1360_v44 = vpack.c.bf16 %v717_v38, %v717_v38  ;;  %v1326_v45 = vpack.c.bf16 %v581_v39, %v581_v39 }
  0xfc   : > { %1097 = vst.msk [vmem:[%s1648_s25 + $0xa0] sm:$0xf] %vm1056_vm3, %v1357_v41  ;;  %1068 = vst.msk [vmem:[%s1648_s25 + $0x2c] sm:$0xf] %vm1056_vm3, %v1328_v42  ;;  %v1358_v46 = vpack.c.bf16 %v709_v43, %v709_v43 }
  0xfd   : > { %1100 = vst.msk [vmem:[%s1648_s25 + $0xac] sm:$0xf] %vm1056_vm3, %v1360_v44  ;;  %1066 = vst.msk [vmem:[%s1648_s25 + $0x24] sm:$0xf] %vm1056_vm3, %v1326_v45  ;;  %v1430_v47 = vpop.f32.mrb[12].mxu0 }
  0xfe   : > { %1098 = vst.msk [vmem:[%s1648_s25 + $0xa4] sm:$0xf] %vm1056_vm3, %v1358_v46  ;;  %v602_v48 = vadd.f32 %v1430_v47, %v1640_v37  ;;  %v1462_v49 = vpop.f32.mrb[12].mxu1  ;;  %v593_v50 = vpop.f32.mrb[13].mxu0 }
  0xff   : > { %v730_v51 = vadd.f32 %v1462_v49, %v1640_v37  ;;  %v594_v52 = vadd.f32 %v1640_v37, %v593_v50  ;;  %v721_v53 = vpop.f32.mrb[13].mxu1  ;;  %v1431_v54 = vpop.f32.mrb[14].mxu0 }
 0x100   : > { %v1331_v55 = vpack.c.bf16 %v602_v48, %v602_v48  ;;  %v722_v56 = vadd.f32 %v1640_v37, %v721_v53  ;;  %v605_v57 = vadd.f32 %v1431_v54, %v1640_v37  ;;  %v1463_v58 = vpop.f32.mrb[14].mxu1  ;;  %v596_v59 = vpop.f32.mrb[15].mxu0 }
 0x101   : > { %v1363_v60 = vpack.c.bf16 %v730_v51, %v730_v51  ;;  %v1329_v61 = vpack.c.bf16 %v594_v52, %v594_v52  ;;  %v733_v62 = vadd.f32 %v1463_v58, %v1640_v37  ;;  %v597_v63 = vadd.f32 %v1640_v37, %v596_v59  ;;  %v724_v0 = vpop.f32.mrb[15].mxu1 }
 0x102   : > { %1071 = vst.msk [vmem:[%s1648_s25 + $0x38] sm:$0xf] %vm1056_vm3, %v1331_v55  ;;  %v1361_v1 = vpack.c.bf16 %v722_v56, %v722_v56  ;;  %v1332_v2 = vpack.c.bf16 %v605_v57, %v605_v57  ;;  %v725_v3 = vadd.f32 %v1640_v37, %v724_v0 }
 0x103   : > { %1103 = vst.msk [vmem:[%s1648_s25 + $0xb8] sm:$0xf] %vm1056_vm3, %v1363_v60  ;;  %1069 = vst.msk [vmem:[%s1648_s25 + $0x30] sm:$0xf] %vm1056_vm3, %v1329_v61  ;;  %v1364_v4 = vpack.c.bf16 %v733_v62, %v733_v62  ;;  %v1330_v5 = vpack.c.bf16 %v597_v63, %v597_v63 }
 0x104   : > { %1101 = vst.msk [vmem:[%s1648_s25 + $0xb0] sm:$0xf] %vm1056_vm3, %v1361_v1  ;;  %1072 = vst.msk [vmem:[%s1648_s25 + $0x3c] sm:$0xf] %vm1056_vm3, %v1332_v2  ;;  %v1362_v6 = vpack.c.bf16 %v725_v3, %v725_v3 }
 0x105   : > { %1104 = vst.msk [vmem:[%s1648_s25 + $0xbc] sm:$0xf] %vm1056_vm3, %v1364_v4  ;;  %1070 = vst.msk [vmem:[%s1648_s25 + $0x34] sm:$0xf] %vm1056_vm3, %v1330_v5  ;;  %v1434_v7 = vpop.f32.mrb[16].mxu0 }
 0x106   : > { %1102 = vst.msk [vmem:[%s1648_s25 + $0xb4] sm:$0xf] %vm1056_vm3, %v1362_v6  ;;  %v618_v8 = vadd.f32 %v1434_v7, %v1640_v37  ;;  %v1466_v9 = vpop.f32.mrb[16].mxu1  ;;  %v609_v10 = vpop.f32.mrb[17].mxu0 }
 0x107   : > { %v746_v11 = vadd.f32 %v1466_v9, %v1640_v37  ;;  %v610_v12 = vadd.f32 %v1640_v37, %v609_v10  ;;  %v737_v13 = vpop.f32.mrb[17].mxu1  ;;  %v1435_v14 = vpop.f32.mrb[18].mxu0 }
 0x108   : > { %v1335_v15 = vpack.c.bf16 %v618_v8, %v618_v8  ;;  %v738_v16 = vadd.f32 %v1640_v37, %v737_v13  ;;  %v621_v17 = vadd.f32 %v1435_v14, %v1640_v37  ;;  %v1467_v18 = vpop.f32.mrb[18].mxu1  ;;  %v612_v19 = vpop.f32.mrb[19].mxu0 }
 0x109   : > { %v1367_v20 = vpack.c.bf16 %v746_v11, %v746_v11  ;;  %v1333_v21 = vpack.c.bf16 %v610_v12, %v610_v12  ;;  %v749_v22 = vadd.f32 %v1467_v18, %v1640_v37  ;;  %v613_v23 = vadd.f32 %v1640_v37, %v612_v19  ;;  %v740_v24 = vpop.f32.mrb[19].mxu1 }
 0x10a   : > { %1075 = vst.msk [vmem:[%s1648_s25 + $0x48] sm:$0xf] %vm1056_vm3, %v1335_v15  ;;  %v1365_v25 = vpack.c.bf16 %v738_v16, %v738_v16  ;;  %v1336_v26 = vpack.c.bf16 %v621_v17, %v621_v17  ;;  %v741_v27 = vadd.f32 %v1640_v37, %v740_v24 }
 0x10b   : > { %1107 = vst.msk [vmem:[%s1648_s25 + $0xc8] sm:$0xf] %vm1056_vm3, %v1367_v20  ;;  %1073 = vst.msk [vmem:[%s1648_s25 + $0x40] sm:$0xf] %vm1056_vm3, %v1333_v21  ;;  %v1368_v28 = vpack.c.bf16 %v749_v22, %v749_v22  ;;  %v1334_v29 = vpack.c.bf16 %v613_v23, %v613_v23 }
 0x10c   : > { %1105 = vst.msk [vmem:[%s1648_s25 + $0xc0] sm:$0xf] %vm1056_vm3, %v1365_v25  ;;  %1076 = vst.msk [vmem:[%s1648_s25 + $0x4c] sm:$0xf] %vm1056_vm3, %v1336_v26  ;;  %v1366_v30 = vpack.c.bf16 %v741_v27, %v741_v27 }
 0x10d   : > { %1108 = vst.msk [vmem:[%s1648_s25 + $0xcc] sm:$0xf] %vm1056_vm3, %v1368_v28  ;;  %1074 = vst.msk [vmem:[%s1648_s25 + $0x44] sm:$0xf] %vm1056_vm3, %v1334_v29  ;;  %v1438_v31 = vpop.f32.mrb[20].mxu0 }
 0x10e   : > { %1106 = vst.msk [vmem:[%s1648_s25 + $0xc4] sm:$0xf] %vm1056_vm3, %v1366_v30  ;;  %v634_v32 = vadd.f32 %v1438_v31, %v1640_v37  ;;  %v1470_v33 = vpop.f32.mrb[20].mxu1  ;;  %v625_v34 = vpop.f32.mrb[21].mxu0 }
 0x10f   : > { %v762_v35 = vadd.f32 %v1470_v33, %v1640_v37  ;;  %v626_v36 = vadd.f32 %v1640_v37, %v625_v34  ;;  %v753_v38 = vpop.f32.mrb[21].mxu1  ;;  %v1439_v39 = vpop.f32.mrb[22].mxu0 }
 0x110   : > { %v1339_v40 = vpack.c.bf16 %v634_v32, %v634_v32  ;;  %v754_v41 = vadd.f32 %v1640_v37, %v753_v38  ;;  %v637_v42 = vadd.f32 %v1439_v39, %v1640_v37  ;;  %v1471_v43 = vpop.f32.mrb[22].mxu1  ;;  %v628_v44 = vpop.f32.mrb[23].mxu0 }
 0x111   : > { %v1371_v45 = vpack.c.bf16 %v762_v35, %v762_v35  ;;  %v1337_v46 = vpack.c.bf16 %v626_v36, %v626_v36  ;;  %v765_v47 = vadd.f32 %v1471_v43, %v1640_v37  ;;  %v629_v48 = vadd.f32 %v1640_v37, %v628_v44  ;;  %v756_v49 = vpop.f32.mrb[23].mxu1 }
 0x112   : > { %1079 = vst.msk [vmem:[%s1648_s25 + $0x58] sm:$0xf] %vm1056_vm3, %v1339_v40  ;;  %v1369_v50 = vpack.c.bf16 %v754_v41, %v754_v41  ;;  %v1340_v51 = vpack.c.bf16 %v637_v42, %v637_v42  ;;  %v757_v52 = vadd.f32 %v1640_v37, %v756_v49 }
 0x113   : > { %1111 = vst.msk [vmem:[%s1648_s25 + $0xd8] sm:$0xf] %vm1056_vm3, %v1371_v45  ;;  %1077 = vst.msk [vmem:[%s1648_s25 + $0x50] sm:$0xf] %vm1056_vm3, %v1337_v46  ;;  %v1372_v53 = vpack.c.bf16 %v765_v47, %v765_v47  ;;  %v1338_v54 = vpack.c.bf16 %v629_v48, %v629_v48 }
 0x114   : > { %1109 = vst.msk [vmem:[%s1648_s25 + $0xd0] sm:$0xf] %vm1056_vm3, %v1369_v50  ;;  %1080 = vst.msk [vmem:[%s1648_s25 + $0x5c] sm:$0xf] %vm1056_vm3, %v1340_v51  ;;  %v1370_v55 = vpack.c.bf16 %v757_v52, %v757_v52 }
 0x115   : > { %1112 = vst.msk [vmem:[%s1648_s25 + $0xdc] sm:$0xf] %vm1056_vm3, %v1372_v53  ;;  %1078 = vst.msk [vmem:[%s1648_s25 + $0x54] sm:$0xf] %vm1056_vm3, %v1338_v54  ;;  %v1442_v56 = vpop.f32.mrb[24].mxu0 }
 0x116   : > { %1110 = vst.msk [vmem:[%s1648_s25 + $0xd4] sm:$0xf] %vm1056_vm3, %v1370_v55  ;;  %v650_v57 = vadd.f32 %v1442_v56, %v1640_v37  ;;  %v1474_v58 = vpop.f32.mrb[24].mxu1  ;;  %v641_v59 = vpop.f32.mrb[25].mxu0 }
 0x117   : > { %v778_v60 = vadd.f32 %v1474_v58, %v1640_v37  ;;  %v642_v61 = vadd.f32 %v1640_v37, %v641_v59  ;;  %v769_v62 = vpop.f32.mrb[25].mxu1  ;;  %v1443_v63 = vpop.f32.mrb[26].mxu0 }
 0x118   : > { %v1343_v0 = vpack.c.bf16 %v650_v57, %v650_v57  ;;  %v770_v1 = vadd.f32 %v1640_v37, %v769_v62  ;;  %v653_v2 = vadd.f32 %v1443_v63, %v1640_v37  ;;  %v1475_v3 = vpop.f32.mrb[26].mxu1  ;;  %v644_v4 = vpop.f32.mrb[27].mxu0 }
 0x119   : > { %v1375_v5 = vpack.c.bf16 %v778_v60, %v778_v60  ;;  %v1341_v6 = vpack.c.bf16 %v642_v61, %v642_v61  ;;  %v781_v7 = vadd.f32 %v1475_v3, %v1640_v37  ;;  %v645_v8 = vadd.f32 %v1640_v37, %v644_v4  ;;  %v772_v9 = vpop.f32.mrb[27].mxu1 }
 0x11a   : > { %1083 = vst.msk [vmem:[%s1648_s25 + $0x68] sm:$0xf] %vm1056_vm3, %v1343_v0  ;;  %v1373_v10 = vpack.c.bf16 %v770_v1, %v770_v1  ;;  %v1344_v11 = vpack.c.bf16 %v653_v2, %v653_v2  ;;  %v773_v12 = vadd.f32 %v1640_v37, %v772_v9 }
 0x11b   : > { %1115 = vst.msk [vmem:[%s1648_s25 + $0xe8] sm:$0xf] %vm1056_vm3, %v1375_v5  ;;  %1081 = vst.msk [vmem:[%s1648_s25 + $0x60] sm:$0xf] %vm1056_vm3, %v1341_v6  ;;  %v1376_v13 = vpack.c.bf16 %v781_v7, %v781_v7  ;;  %v1342_v14 = vpack.c.bf16 %v645_v8, %v645_v8 }
 0x11c   : > { %1113 = vst.msk [vmem:[%s1648_s25 + $0xe0] sm:$0xf] %vm1056_vm3, %v1373_v10  ;;  %1084 = vst.msk [vmem:[%s1648_s25 + $0x6c] sm:$0xf] %vm1056_vm3, %v1344_v11  ;;  %v1374_v15 = vpack.c.bf16 %v773_v12, %v773_v12 }
 0x11d   : > { %1116 = vst.msk [vmem:[%s1648_s25 + $0xec] sm:$0xf] %vm1056_vm3, %v1376_v13  ;;  %1082 = vst.msk [vmem:[%s1648_s25 + $0x64] sm:$0xf] %vm1056_vm3, %v1342_v14  ;;  %v1446_v16 = vpop.f32.mrb[28].mxu0 }
 0x11e   : > { %1114 = vst.msk [vmem:[%s1648_s25 + $0xe4] sm:$0xf] %vm1056_vm3, %v1374_v15  ;;  %v666_v17 = vadd.f32 %v1446_v16, %v1640_v37  ;;  %v1478_v18 = vpop.f32.mrb[28].mxu1  ;;  %v657_v19 = vpop.f32.mrb[29].mxu0 }
 0x11f   : > { %v794_v20 = vadd.f32 %v1478_v18, %v1640_v37  ;;  %v658_v21 = vadd.f32 %v1640_v37, %v657_v19  ;;  %v785_v22 = vpop.f32.mrb[29].mxu1  ;;  %v1447_v23 = vpop.f32.mrb[30].mxu0 }
 0x120   : > { %v1347_v24 = vpack.c.bf16 %v666_v17, %v666_v17  ;;  %v786_v25 = vadd.f32 %v1640_v37, %v785_v22  ;;  %v669_v26 = vadd.f32 %v1447_v23, %v1640_v37  ;;  %v1479_v27 = vpop.f32.mrb[30].mxu1  ;;  %v660_v28 = vpop.f32.mrb[31].mxu0 }
 0x121   : > { %v1379_v29 = vpack.c.bf16 %v794_v20, %v794_v20  ;;  %v1345_v30 = vpack.c.bf16 %v658_v21, %v658_v21  ;;  %v797_v31 = vadd.f32 %v1479_v27, %v1640_v37  ;;  %v661_v32 = vadd.f32 %v1640_v37, %v660_v28  ;;  %v788_v33 = vpop.f32.mrb[31].mxu1 }
 0x122   : > { %1087 = vst.msk [vmem:[%s1648_s25 + $0x78] sm:$0xf] %vm1056_vm3, %v1347_v24  ;;  %v1377_v34 = vpack.c.bf16 %v786_v25, %v786_v25  ;;  %v1348_v35 = vpack.c.bf16 %v669_v26, %v669_v26  ;;  %v789_v36 = vadd.f32 %v1640_v37, %v788_v33 }
 0x123   : > { %1119 = vst.msk [vmem:[%s1648_s25 + $0xf8] sm:$0xf] %vm1056_vm3, %v1379_v29  ;;  %1085 = vst.msk [vmem:[%s1648_s25 + $0x70] sm:$0xf] %vm1056_vm3, %v1345_v30  ;;  %v1380_v38 = vpack.c.bf16 %v797_v31, %v797_v31  ;;  %v1346_v39 = vpack.c.bf16 %v661_v32, %v661_v32 }
 0x124   : > { %1117 = vst.msk [vmem:[%s1648_s25 + $0xf0] sm:$0xf] %vm1056_vm3, %v1377_v34  ;;  %1088 = vst.msk [vmem:[%s1648_s25 + $0x7c] sm:$0xf] %vm1056_vm3, %v1348_v35  ;;  %v1378_v40 = vpack.c.bf16 %v789_v36, %v789_v36 }
 0x125   : > { %1120 = vst.msk [vmem:[%s1648_s25 + $0xfc] sm:$0xf] %vm1056_vm3, %v1380_v38  ;;  %1086 = vst.msk [vmem:[%s1648_s25 + $0x74] sm:$0xf] %vm1056_vm3, %v1346_v39 }
 0x126   : > { %1118 = vst.msk [vmem:[%s1648_s25 + $0xf4] sm:$0xf] %vm1056_vm3, %v1378_v40 }
 0x127 PF: > { %s13_s12 = sadd.s32 1, %s1529_s12  }
 0x128   : > { %p10_p4 = scmp.ge.s32.totalorder %s13_s12, 6  }
 0x12a   :  { %12 = sbr.rel (!%p10_p4) target bundleno = 1 (0x1), region = 62 }

</bundles_post_ra>
